<compile_context>
chip_gen: v6e
topology: v6e:2x2x1
jax: 0.10.0
libtpu: 0.0.40
codegen_flags: <defaults>
</compile_context>

<pallas_src>
import functools

import jax
import jax.numpy as jnp
from jax.experimental import pallas as pl
from jax.experimental.pallas import tpu as pltpu

H_PAD = 128                      # hidden dim padded to full lane width
MAX_TM = 1024                    # row tile cap
MAX_TK = 1024                    # K tile cap (A tile bf16 <= 2 MiB)
XW_RESIDENT_MAX_ROWS = 16384     # keep whole XW in VMEM when n_pad <= this
VMEM_LIMIT = 48 * 1024 * 1024    # fits v7x 64 MiB physical VMEM with headroom


def _round_up(x, m):
    return (x + m - 1) // m * m


def _row_tiling(n):
    """(n_pad, tm): 128-aligned row tile, capped at MAX_TM; when the graph is
    big enough, guarantee >=2 row tiles so v7x's two TensorCores both work."""
    n128 = _round_up(max(n, 1), 128)
    tm = min(MAX_TM, n128)
    if n128 > 128 and n128 // tm < 2:
        tm = _round_up(n128 // 2, 128)
    n_pad = _round_up(n128, tm)
    return n_pad, tm


def _k_tiling(n_pad):
    """Largest multiple of 128 <= MAX_TK that divides n_pad."""
    tk = min(MAX_TK, n_pad)
    while n_pad % tk != 0:
        tk -= 128
    return tk


# --------------------------------------------------------------------------
# Kernels (factories close over tk / xw_resident)
# --------------------------------------------------------------------------
def _make_conv1_kernel(tk, xw_resident):
    """acc = sum_k A[i,k] @ XW1[k]; epilogue: out = relu(acc + b1) @ W2."""

    def kernel(a_ref, xw_ref, b1_ref, w2_ref, out_ref, acc_ref):
        k = pl.program_id(1)

        @pl.when(k == 0)
        def _init():
            acc_ref[...] = jnp.zeros_like(acc_ref)

        if xw_resident:
            start = pl.multiple_of(k * tk, tk)
            xw = xw_ref[pl.ds(start, tk), :]
        else:
            xw = xw_ref[...]
        acc_ref[...] += jnp.dot(a_ref[...], xw,
                                preferred_element_type=jnp.float32)

        @pl.when(k == pl.num_programs(1) - 1)
        def _fini():
            h1 = jnp.maximum(acc_ref[...] + b1_ref[...], 0.0
                             ).astype(jnp.bfloat16)
            # Fused layer-2 feature transform: store h1 @ W2 (bf16, lane-dense)
            out_ref[...] = jnp.dot(h1, w2_ref[...],
                                   preferred_element_type=jnp.float32
                                   ).astype(out_ref.dtype)

    return kernel


def _make_conv2_head_kernel(tk, xw_resident):
    """acc = sum_k A[i,k] @ XW2[k]; epilogue fuses relu + linear head."""

    def kernel(a_ref, xw_ref, b2_ref, w3_ref, b3_ref, out_ref, acc_ref):
        k = pl.program_id(1)

        @pl.when(k == 0)
        def _init():
            acc_ref[...] = jnp.zeros_like(acc_ref)

        if xw_resident:
            start = pl.multiple_of(k * tk, tk)
            xw = xw_ref[pl.ds(start, tk), :]
        else:
            xw = xw_ref[...]
        acc_ref[...] += jnp.dot(a_ref[...], xw,
                                preferred_element_type=jnp.float32)

        @pl.when(k == pl.num_programs(1) - 1)
        def _fini():
            h2 = jnp.maximum(acc_ref[...] + b2_ref[...], 0.0)       # [tm,128]
            head = jnp.sum(h2 * w3_ref[...], axis=-1, keepdims=True) + b3_ref[0]
            # Broadcast across lanes -> unmasked lane-dense store (bf16).
            out_ref[...] = jnp.broadcast_to(head, out_ref.shape
                                            ).astype(out_ref.dtype)

    return kernel


# --------------------------------------------------------------------------
# pallas_call wrapper shared by both layers
# --------------------------------------------------------------------------
def _aggregate(kernel, a_p, xw, extras, extra_specs, tm, tk, xw_resident,
               flops, bytes_accessed):
    n_pad = a_p.shape[0]
    ni, nk = n_pad // tm, n_pad // tk

    a_kwargs = {}
    if ni * nk >= 4:
        # DMA-bound, strided A tile stream: deeper pipeline hides issue latency
        a_kwargs["pipeline_mode"] = pl.Buffered(3)
    a_spec = pl.BlockSpec((tm, tk), lambda i, k: (i, k), **a_kwargs)

    if xw_resident:
        # Whole XW resident in VMEM (constant block index -> DMA'd once).
        xw_spec = pl.BlockSpec((n_pad, H_PAD), lambda i, k: (0, 0))
    else:
        xw_spec = pl.BlockSpec((tk, H_PAD), lambda i, k: (k, 0))

    return pl.pallas_call(
        kernel,
        out_shape=jax.ShapeDtypeStruct((n_pad, H_PAD), jnp.bfloat16),
        grid_spec=pltpu.PrefetchScalarGridSpec(
            num_scalar_prefetch=0,
            grid=(ni, nk),
            in_specs=[a_spec, xw_spec] + extra_specs,
            out_specs=pl.BlockSpec((tm, H_PAD), lambda i, k: (i, 0)),
            scratch_shapes=[pltpu.VMEM((tm, H_PAD), jnp.float32)],
        ),
        compiler_params=pltpu.CompilerParams(
            dimension_semantics=("parallel", "arbitrary"),
            vmem_limit_bytes=VMEM_LIMIT,
        ),
        cost_estimate=pl.CostEstimate(flops=flops, transcendentals=0,
                                      bytes_accessed=bytes_accessed),
    )(a_p, xw, *extras)


# --------------------------------------------------------------------------
# Full forward
# --------------------------------------------------------------------------
@functools.partial(jax.jit, static_argnames=("num_nodes",))
def gcn_forward(a_p, x, w1, b1, w2, b2, w3, b3, *, num_nodes):
    """GCN forward. a_p: prebuilt padded bf16 A_hat [(n_pad, n_pad)]."""
    n, f = x.shape
    h = w1.shape[1]
    n_pad, tm = _row_tiling(num_nodes)
    assert n_pad == a_p.shape[0], "A_hat padding inconsistent with _row_tiling"
    tk = _k_tiling(n_pad)
    xw_resident = n_pad <= XW_RESIDENT_MAX_ROWS
    reread = 1 if xw_resident else (n_pad // tm)

    # Zero-pad parameters to lane width 128 (padded lanes stay exactly 0).
    w1_p = jnp.zeros((f, H_PAD), jnp.float32).at[:, :h].set(w1)
    b1_p = jnp.zeros((1, H_PAD), jnp.float32).at[:, :h].set(
        jnp.reshape(b1, (1, -1)))
    w2_p = jnp.zeros((H_PAD, H_PAD), jnp.bfloat16).at[:h, :h].set(
        w2.astype(jnp.bfloat16))
    b2_p = jnp.zeros((1, H_PAD), jnp.float32).at[:, :h].set(
        jnp.reshape(b2, (1, -1)))
    w3_row = jnp.zeros((1, H_PAD), jnp.float32).at[0, :h].set(w3[:, 0])
    b3_s = jnp.reshape(b3, (1,)).astype(jnp.float32)

    # Tiny feature transform (contraction dim F) stays in XLA.
    x_p = jnp.zeros((n_pad, f), jnp.float32).at[:n].set(x)
    xw1 = jnp.dot(x_p, w1_p, preferred_element_type=jnp.float32
                  ).astype(jnp.bfloat16)

    # Layer 1 + fused layer-2 feature transform: xw2 = relu(A @ XW1 + b1) @ W2
    flops1 = 2 * n_pad * n_pad * H_PAD + 2 * n_pad * H_PAD * H_PAD
    bytes1 = (a_p.size * 2 + xw1.size * 2 * reread + n_pad * H_PAD * 2
              + b1_p.size * 4 + w2_p.size * 2)
    xw2 = _aggregate(
        _make_conv1_kernel(tk, xw_resident), a_p, xw1,
        extras=[b1_p, w2_p],
        extra_specs=[pl.BlockSpec((1, H_PAD), lambda i, k: (0, 0)),      # b1
                     pl.BlockSpec((H_PAD, H_PAD), lambda i, k: (0, 0))], # W2
        tm=tm, tk=tk, xw_resident=xw_resident,
        flops=flops1, bytes_accessed=bytes1)

    # Layer 2 + linear head fused: relu(A @ XW2 + b2) @ w3 + b3
    flops2 = 2 * n_pad * n_pad * H_PAD + 2 * n_pad * H_PAD
    bytes2 = (a_p.size * 2 + xw2.size * 2 * reread + n_pad * H_PAD * 2
              + (b2_p.size + w3_row.size) * 4 + 4)
    out_pad = _aggregate(
        _make_conv2_head_kernel(tk, xw_resident), a_p, xw2,
        extras=[b2_p, w3_row, b3_s],
        extra_specs=[pl.BlockSpec((1, H_PAD), lambda i, k: (0, 0)),      # b2
                     pl.BlockSpec((1, H_PAD), lambda i, k: (0, 0)),      # w3
                     pl.BlockSpec(memory_space=pltpu.MemorySpace.SMEM)], # b3
        tm=tm, tk=tk, xw_resident=xw_resident,
        flops=flops2, bytes_accessed=bytes2)

    return out_pad[:num_nodes, :1].astype(jnp.float32)


def build_normalized_adjacency(edge_index, edge_weight, num_nodes,
                               num_nodes_padded):
    """Dense D^{-1/2}(A_w + I)D^{-1/2} (PyG gcn_norm), built directly at the
    padded size and cast once to bf16. The graph is static: build once, reuse
    across forward calls (glue code, not a kernel)."""
    src = edge_index[0]
    dst = edge_index[1]
    loop = jnp.arange(num_nodes, dtype=src.dtype)
    src = jnp.concatenate([src, loop])
    dst = jnp.concatenate([dst, loop])
    w = jnp.concatenate([edge_weight.astype(jnp.float32),
                         jnp.ones((num_nodes,), jnp.float32)])

    deg = jnp.zeros((num_nodes,), jnp.float32).at[dst].add(w)
    dinv = jnp.where(deg > 0, 1.0 / jnp.sqrt(deg), 0.0)
    norm = dinv[src] * w * dinv[dst]

    a_pad = jnp.zeros((num_nodes_padded, num_nodes_padded), jnp.float32
                      ).at[dst, src].add(norm)
    return a_pad.astype(jnp.bfloat16)
    # TODO(synk): for large sparse graphs, replace the dense A_hat with a
    # CSR / block-sparse PrefetchScalarGridSpec formulation.


# --------------------------------------------------------------------------
# Demo / self-test
# --------------------------------------------------------------------------
def _run_case(seed, num_nodes, num_edges, num_node_features, hidden_dim):
    key = jax.random.PRNGKey(seed)
    k_x, k_w, k_e1, k_e2, k_ew = jax.random.split(key, 5)

    x = jax.random.normal(k_x, (num_nodes, num_node_features), jnp.float32)
    src = jax.random.randint(k_e1, (num_edges,), 0, num_nodes, jnp.int32)
    dst = jax.random.randint(k_e2, (num_edges,), 0, num_nodes, jnp.int32)
    edge_index = jnp.stack([src, dst], axis=0)
    edge_weight = jax.random.uniform(k_ew, (num_edges,), jnp.float32, 0.1, 1.0)

    kw1, kw2, kw3 = jax.random.split(k_w, 3)
    w1 = jax.random.normal(kw1, (num_node_features, hidden_dim), jnp.float32) * (
        1.0 / jnp.sqrt(num_node_features))
    b1 = jnp.zeros((1, hidden_dim), jnp.float32)
    w2 = jax.random.normal(kw2, (hidden_dim, hidden_dim), jnp.float32) * (
        1.0 / jnp.sqrt(hidden_dim))
    b2 = jnp.zeros((1, hidden_dim), jnp.float32)
    w3 = jax.random.normal(kw3, (hidden_dim, 1), jnp.float32) * (
        1.0 / jnp.sqrt(hidden_dim))
    b3 = jnp.zeros((1, 1), jnp.float32)

    n_pad, _ = _row_tiling(num_nodes)
    a_p = build_normalized_adjacency(edge_index, edge_weight, num_nodes, n_pad)

    out = gcn_forward(a_p, x, w1, b1, w2, b2, w3, b3, num_nodes=num_nodes)
    out = jax.block_until_ready(out)
    assert out.shape == (num_nodes, 1)
    assert bool(jnp.all(jnp.isfinite(out)))

    # Pure-JAX f32 reference using the same (bf16-quantized) A_hat; the bf16
    # representation of A is an explicit design choice, the kernel math is f32.
    a_ref = a_p[:num_nodes, :num_nodes].astype(jnp.float32)
    h1_ref = jnp.maximum(a_ref @ (x @ w1) + b1, 0.0)
    h2_ref = jnp.maximum(a_ref @ (h1_ref @ w2) + b2, 0.0)
    ref = h2_ref @ w3 + b3
    assert bool(jnp.allclose(out, ref, rtol=5e-2, atol=3e-2)), (
        float(jnp.max(jnp.abs(out - ref))))


if __name__ == "__main__":
    # Small case: single tile, resident XW.
    _run_case(seed=0, num_nodes=16, num_edges=32,
              num_node_features=4, hidden_dim=32)
    # Slightly larger case: padded rows, 2 row tiles ("parallel" axis), still small.
    _run_case(seed=1, num_nodes=300, num_edges=2000,
              num_node_features=4, hidden_dim=32)
    print("KERNEL_OK")
</pallas_src>

<mosaic_0001>
module attributes {stable_mosaic.version = 11 : i64} {
  func.func @kernel(%arg0: i32, %arg1: i32, %arg2: memref<128x128xbf16, #tpu.memory_space<vmem>>, %arg3: memref<128x128xbf16, #tpu.memory_space<vmem>>, %arg4: memref<1x128xf32, #tpu.memory_space<vmem>>, %arg5: memref<128x128xbf16, #tpu.memory_space<vmem>>, %arg6: memref<128x128xbf16, #tpu.memory_space<vmem>>, %arg7: memref<128x128xf32, #tpu.memory_space<vmem>>) attributes {dimension_semantics = [#tpu.dimension_semantics<parallel>, #tpu.dimension_semantics<arbitrary>], iteration_bounds = array<i64: 1, 1>, scalar_prefetch = 0 : i64, scratch_operands = 1 : i64, tpu.core_type = #tpu.core_type<tc>, window_params = [{transform_indices = @transform_0, window_bounds = array<i64: 128, 128>}, {pipeline_mode = #tpu.pipeline_mode<synchronous>, transform_indices = @transform_1, window_bounds = array<i64: 128, 128>}, {pipeline_mode = #tpu.pipeline_mode<synchronous>, transform_indices = @transform_2, window_bounds = array<i64: 1, 128>}, {pipeline_mode = #tpu.pipeline_mode<synchronous>, transform_indices = @transform_3, window_bounds = array<i64: 128, 128>}, {transform_indices = @transform_4, window_bounds = array<i64: 128, 128>}]} {
    %c0_i32 = arith.constant 0 : i32
    %0 = arith.cmpi eq, %arg1, %c0_i32 : i32
    %1 = arith.extui %0 : i1 to i32
    %c0_i32_0 = arith.constant 0 : i32
    %2 = arith.cmpi ne, %1, %c0_i32_0 : i32
    scf.if %2 {
      %cst_9 = arith.constant 0.000000e+00 : f32
      %15 = vector.broadcast %cst_9 : f32 to vector<128x128xf32>
      %c0_10 = arith.constant 0 : index
      %c0_11 = arith.constant 0 : index
      %16 = vector.load %arg7[%c0_10, %c0_11] : memref<128x128xf32, #tpu.memory_space<vmem>>, vector<128x128xf32>
      tpu.vector_store %arg7[%c0_10, %c0_11], %15 {strides = array<i32>} : memref<128x128xf32, #tpu.memory_space<vmem>>, vector<128x128xf32>,
    } else {
    }
    %c128_i32 = arith.constant 128 : i32
    %3 = arith.muli %arg1, %c128_i32 : i32
    %4 = tpu.assume_multiple %3, 128 : i32
    %5 = arith.index_cast %4 : i32 to index
    %c0 = arith.constant 0 : index
    %6 = vector.load %arg3[%5, %c0] : memref<128x128xbf16, #tpu.memory_space<vmem>>, vector<128x128xbf16>
    %c0_1 = arith.constant 0 : index
    %c0_2 = arith.constant 0 : index
    %7 = vector.load %arg7[%c0_1, %c0_2] : memref<128x128xf32, #tpu.memory_space<vmem>>, vector<128x128xf32>
    %c0_3 = arith.constant 0 : index
    %c0_4 = arith.constant 0 : index
    %8 = vector.load %arg2[%c0_3, %c0_4] : memref<128x128xbf16, #tpu.memory_space<vmem>>, vector<128x128xbf16>
    %cst = arith.constant dense<0.000000e+00> : vector<128x128xf32>
    %9 = tpu.matmul %8, %6, %cst {dimension_numbers = #tpu.dot_dimension_numbers<[1], [0], [0], [1], [0, 0, 1, 1], [], []>} : vector<128x128xbf16>, vector<128x128xbf16>, vector<128x128xf32> -> vector<128x128xf32>
    %10 = arith.addf %7, %9 : vector<128x128xf32>
    %c0_5 = arith.constant 0 : index
    %c0_6 = arith.constant 0 : index
    %11 = vector.load %arg7[%c0_5, %c0_6] : memref<128x128xf32, #tpu.memory_space<vmem>>, vector<128x128xf32>
    tpu.vector_store %arg7[%c0_5, %c0_6], %10 {strides = array<i32>} : memref<128x128xf32, #tpu.memory_space<vmem>>, vector<128x128xf32>,
    %c0_i32_7 = arith.constant 0 : i32
    %12 = arith.cmpi eq, %arg1, %c0_i32_7 : i32
    %13 = arith.extui %12 : i1 to i32
    %c0_i32_8 = arith.constant 0 : i32
    %14 = arith.cmpi ne, %13, %c0_i32_8 : i32
    scf.if %14 {
      %c0_9 = arith.constant 0 : index
      %c0_10 = arith.constant 0 : index
      %15 = vector.load %arg7[%c0_9, %c0_10] : memref<128x128xf32, #tpu.memory_space<vmem>>, vector<128x128xf32>
      %c0_11 = arith.constant 0 : index
      %c0_12 = arith.constant 0 : index
      %16 = vector.load %arg4[%c0_11, %c0_12] : memref<1x128xf32, #tpu.memory_space<vmem>>, vector<1x128xf32>
      %17 = vector.broadcast %16 : vector<1x128xf32> to vector<128x128xf32>
      %18 = arith.addf %15, %17 : vector<128x128xf32>
      %cst_13 = arith.constant 0.000000e+00 : f32
      %19 = vector.broadcast %cst_13 : f32 to vector<128x128xf32>
      %20 = arith.maximumf %18, %19 : vector<128x128xf32>
      %21 = arith.truncf %20 : vector<128x128xf32> to vector<128x128xbf16>
      %c0_14 = arith.constant 0 : index
      %c0_15 = arith.constant 0 : index
      %22 = vector.load %arg5[%c0_14, %c0_15] : memref<128x128xbf16, #tpu.memory_space<vmem>>, vector<128x128xbf16>
      %cst_16 = arith.constant dense<0.000000e+00> : vector<128x128xf32>
      %23 = tpu.matmul %21, %22, %cst_16 {dimension_numbers = #tpu.dot_dimension_numbers<[1], [0], [0], [1], [0, 0, 1, 1], [], []>} : vector<128x128xbf16>, vector<128x128xbf16>, vector<128x128xf32> -> vector<128x128xf32>
      %24 = arith.truncf %23 : vector<128x128xf32> to vector<128x128xbf16>
      %c0_17 = arith.constant 0 : index
      %c0_18 = arith.constant 0 : index
      %25 = vector.load %arg6[%c0_17, %c0_18] : memref<128x128xbf16, #tpu.memory_space<vmem>>, vector<128x128xbf16>
      tpu.vector_store %arg6[%c0_17, %c0_18], %24 {strides = array<i32>} : memref<128x128xbf16, #tpu.memory_space<vmem>>, vector<128x128xbf16>,
    } else {
    }
    return
  }
  func.func @transform_0(%arg0: i32, %arg1: i32) -> (i32, i32) {
    %c0_i32 = arith.constant 0 : i32
    return %arg0, %arg1 : i32, i32
  }
  func.func @transform_1(%arg0: i32, %arg1: i32) -> (i32, i32) {
    %c0_i32 = arith.constant 0 : i32
    %c0_i32_0 = arith.constant 0 : i32
    %c0_i32_1 = arith.constant 0 : i32
    return %c0_i32, %c0_i32_0 : i32, i32
  }
  func.func @transform_2(%arg0: i32, %arg1: i32) -> (i32, i32) {
    %c0_i32 = arith.constant 0 : i32
    %c0_i32_0 = arith.constant 0 : i32
    %c0_i32_1 = arith.constant 0 : i32
    return %c0_i32, %c0_i32_0 : i32, i32
  }
  func.func @transform_3(%arg0: i32, %arg1: i32) -> (i32, i32) {
    %c0_i32 = arith.constant 0 : i32
    %c0_i32_0 = arith.constant 0 : i32
    %c0_i32_1 = arith.constant 0 : i32
    return %c0_i32, %c0_i32_0 : i32, i32
  }
  func.func @transform_4(%arg0: i32, %arg1: i32) -> (i32, i32) {
    %c0_i32 = arith.constant 0 : i32
    %c0_i32_0 = arith.constant 0 : i32
    return %arg0, %c0_i32 : i32, i32
  }
}

module attributes {stable_mosaic.version = 11 : i64} {
  func.func @kernel(%arg0: i32, %arg1: i32, %arg2: memref<128x128xbf16, #tpu.memory_space<vmem>>, %arg3: memref<128x128xbf16, #tpu.memory_space<vmem>>, %arg4: memref<1x128xf32, #tpu.memory_space<vmem>>, %arg5: memref<1x128xf32, #tpu.memory_space<vmem>>, %arg6: memref<1xf32, #tpu.memory_space<smem>>, %arg7: memref<128x128xbf16, #tpu.memory_space<vmem>>, %arg8: memref<128x128xf32, #tpu.memory_space<vmem>>) attributes {dimension_semantics = [#tpu.dimension_semantics<parallel>, #tpu.dimension_semantics<arbitrary>], iteration_bounds = array<i64: 1, 1>, scalar_prefetch = 0 : i64, scratch_operands = 1 : i64, tpu.core_type = #tpu.core_type<tc>, window_params = [{transform_indices = @transform_0, window_bounds = array<i64: 128, 128>}, {pipeline_mode = #tpu.pipeline_mode<synchronous>, transform_indices = @transform_1, window_bounds = array<i64: 128, 128>}, {pipeline_mode = #tpu.pipeline_mode<synchronous>, transform_indices = @transform_2, window_bounds = array<i64: 1, 128>}, {pipeline_mode = #tpu.pipeline_mode<synchronous>, transform_indices = @transform_3, window_bounds = array<i64: 1, 128>}, {transform_indices = @transform_4, window_bounds = array<i64: 1>}, {transform_indices = @transform_5, window_bounds = array<i64: 128, 128>}]} {
    %c0_i32 = arith.constant 0 : i32
    %0 = arith.cmpi eq, %arg1, %c0_i32 : i32
    %1 = arith.extui %0 : i1 to i32
    %c0_i32_0 = arith.constant 0 : i32
    %2 = arith.cmpi ne, %1, %c0_i32_0 : i32
    scf.if %2 {
      %cst_9 = arith.constant 0.000000e+00 : f32
      %15 = vector.broadcast %cst_9 : f32 to vector<128x128xf32>
      %c0_10 = arith.constant 0 : index
      %c0_11 = arith.constant 0 : index
      %16 = vector.load %arg8[%c0_10, %c0_11] : memref<128x128xf32, #tpu.memory_space<vmem>>, vector<128x128xf32>
      tpu.vector_store %arg8[%c0_10, %c0_11], %15 {strides = array<i32>} : memref<128x128xf32, #tpu.memory_space<vmem>>, vector<128x128xf32>,
    } else {
    }
    %c128_i32 = arith.constant 128 : i32
    %3 = arith.muli %arg1, %c128_i32 : i32
    %4 = tpu.assume_multiple %3, 128 : i32
    %5 = arith.index_cast %4 : i32 to index
    %c0 = arith.constant 0 : index
    %6 = vector.load %arg3[%5, %c0] : memref<128x128xbf16, #tpu.memory_space<vmem>>, vector<128x128xbf16>
    %c0_1 = arith.constant 0 : index
    %c0_2 = arith.constant 0 : index
    %7 = vector.load %arg8[%c0_1, %c0_2] : memref<128x128xf32, #tpu.memory_space<vmem>>, vector<128x128xf32>
    %c0_3 = arith.constant 0 : index
    %c0_4 = arith.constant 0 : index
    %8 = vector.load %arg2[%c0_3, %c0_4] : memref<128x128xbf16, #tpu.memory_space<vmem>>, vector<128x128xbf16>
    %cst = arith.constant dense<0.000000e+00> : vector<128x128xf32>
    %9 = tpu.matmul %8, %6, %cst {dimension_numbers = #tpu.dot_dimension_numbers<[1], [0], [0], [1], [0, 0, 1, 1], [], []>} : vector<128x128xbf16>, vector<128x128xbf16>, vector<128x128xf32> -> vector<128x128xf32>
    %10 = arith.addf %7, %9 : vector<128x128xf32>
    %c0_5 = arith.constant 0 : index
    %c0_6 = arith.constant 0 : index
    %11 = vector.load %arg8[%c0_5, %c0_6] : memref<128x128xf32, #tpu.memory_space<vmem>>, vector<128x128xf32>
    tpu.vector_store %arg8[%c0_5, %c0_6], %10 {strides = array<i32>} : memref<128x128xf32, #tpu.memory_space<vmem>>, vector<128x128xf32>,
    %c0_i32_7 = arith.constant 0 : i32
    %12 = arith.cmpi eq, %arg1, %c0_i32_7 : i32
    %13 = arith.extui %12 : i1 to i32
    %c0_i32_8 = arith.constant 0 : i32
    %14 = arith.cmpi ne, %13, %c0_i32_8 : i32
    scf.if %14 {
      %c0_9 = arith.constant 0 : index
      %c0_10 = arith.constant 0 : index
      %15 = vector.load %arg8[%c0_9, %c0_10] : memref<128x128xf32, #tpu.memory_space<vmem>>, vector<128x128xf32>
      %c0_11 = arith.constant 0 : index
      %c0_12 = arith.constant 0 : index
      %16 = vector.load %arg4[%c0_11, %c0_12] : memref<1x128xf32, #tpu.memory_space<vmem>>, vector<1x128xf32>
      %17 = vector.broadcast %16 : vector<1x128xf32> to vector<128x128xf32>
      %18 = arith.addf %15, %17 : vector<128x128xf32>
      %cst_13 = arith.constant 0.000000e+00 : f32
      %19 = vector.broadcast %cst_13 : f32 to vector<128x128xf32>
      %20 = arith.maximumf %18, %19 : vector<128x128xf32>
      %c0_14 = arith.constant 0 : index
      %c0_15 = arith.constant 0 : index
      %21 = vector.load %arg5[%c0_14, %c0_15] : memref<1x128xf32, #tpu.memory_space<vmem>>, vector<1x128xf32>
      %22 = vector.broadcast %21 : vector<1x128xf32> to vector<128x128xf32>
      %23 = arith.mulf %20, %22 : vector<128x128xf32>
      %cst_16 = arith.constant dense<0.000000e+00> : vector<128xf32>
      %24 = vector.multi_reduction <add>, %23, %cst_16 [1] : vector<128x128xf32> to vector<128xf32>
      %25 = vector.shape_cast %24 : vector<128xf32> to vector<128x1xf32>
      %c0_17 = arith.constant 0 : index
      %26 = memref.load %arg6[%c0_17] : memref<1xf32, #tpu.memory_space<smem>>
      %27 = vector.broadcast %26 : f32 to vector<128x1xf32>
      %28 = arith.addf %25, %27 : vector<128x1xf32>
      %29 = vector.shape_cast %28 : vector<128x1xf32> to vector<128x1xf32>
      %30 = vector.broadcast %29 : vector<128x1xf32> to vector<128x128xf32>
      %31 = arith.truncf %30 : vector<128x128xf32> to vector<128x128xbf16>
      %c0_18 = arith.constant 0 : index
      %c0_19 = arith.constant 0 : index
      %32 = vector.load %arg7[%c0_18, %c0_19] : memref<128x128xbf16, #tpu.memory_space<vmem>>, vector<128x128xbf16>
      tpu.vector_store %arg7[%c0_18, %c0_19], %31 {strides = array<i32>} : memref<128x128xbf16, #tpu.memory_space<vmem>>, vector<128x128xbf16>,
    } else {
    }
    return
  }
  func.func @transform_0(%arg0: i32, %arg1: i32) -> (i32, i32) {
    %c0_i32 = arith.constant 0 : i32
    return %arg0, %arg1 : i32, i32
  }
  func.func @transform_1(%arg0: i32, %arg1: i32) -> (i32, i32) {
    %c0_i32 = arith.constant 0 : i32
    %c0_i32_0 = arith.constant 0 : i32
    %c0_i32_1 = arith.constant 0 : i32
    return %c0_i32, %c0_i32_0 : i32, i32
  }
  func.func @transform_2(%arg0: i32, %arg1: i32) -> (i32, i32) {
    %c0_i32 = arith.constant 0 : i32
    %c0_i32_0 = arith.constant 0 : i32
    %c0_i32_1 = arith.constant 0 : i32
    return %c0_i32, %c0_i32_0 : i32, i32
  }
  func.func @transform_3(%arg0: i32, %arg1: i32) -> (i32, i32) {
    %c0_i32 = arith.constant 0 : i32
    %c0_i32_0 = arith.constant 0 : i32
    %c0_i32_1 = arith.constant 0 : i32
    return %c0_i32, %c0_i32_0 : i32, i32
  }
  func.func @transform_4(%arg0: i32, %arg1: i32) -> i32 {
    %c0_i32 = arith.constant 0 : i32
    %c0_i32_0 = arith.constant 0 : i32
    return %c0_i32 : i32
  }
  func.func @transform_5(%arg0: i32, %arg1: i32) -> (i32, i32) {
    %c0_i32 = arith.constant 0 : i32
    %c0_i32_0 = arith.constant 0 : i32
    return %arg0, %c0_i32 : i32, i32
  }
}

</mosaic_0001>

<bundles_post_ra>
// kernel: gcn_forward.2
= control target key start
LH: loop header
LB: loop body
LE: loop exit
PB: predicated region body
PF: predicated region fallthrough
CT: control target
= control target key end

     0   :  { %s977_s1 = inlined_call_operand.vmem [shape: bf16[128,128], index: 1, kind: input, shape index: {}]   ;;  %s978_s0 = inlined_call_operand.vmem [shape: bf16[128,128], index: 0, kind: input, shape index: {}]   ;;  %s979_s3 = inlined_call_operand.vmem [shape: bf16[128,128], index: 3, kind: input, shape index: {}]   ;;  %s980_s2 = inlined_call_operand.vmem [shape: f32[1,128], index: 2, kind: input, shape index: {}]   ;;  %s981_s4 = inlined_call_operand.vmem [shape: bf16[128,128], index: 4, kind: output, shape index: {}]  }
   0x1   :  { %v829_v0 = vld [vmem:[%s977_s1 + $0x38] sm:$0xff]   ;;  %v830_v1 = vld [vmem:[%s977_s1 + $0x30] sm:$0xff]   ;;  %v831_v2 = vld [vmem:[%s977_s1 + $0x28] sm:$0xff]  }
   0x2   :  { %765 = vmatprep.subr.bf16.mxu0 %v829_v0  ;;  %v832_v3 = vld [vmem:[%s977_s1 + $0x20] sm:$0xff]   ;;  %v833_v5 = vld [vmem:[%s977_s1 + $0x18] sm:$0xff]   ;;  %v834_v6 = vld [vmem:[%s977_s1 + $0x10] sm:$0xff]  }
   0x3   :  { %766 = vmatpush3.bf16.msra.mxu0 %v829_v0  ;;  %v837_v4 = vld [vmem:[%s978_s0] sm:$0xff]   ;;  %v845_v7 = vld [vmem:[%s979_s3 + $0x38] sm:$0xff]   ;;  %v846_v8 = vld [vmem:[%s979_s3 + $0x30] sm:$0xff]  }
   0x4   :  { %767 = vmatprep.subr.bf16.mxu0 %v830_v1  ;;  %781 = vmatprep.mubr.bf16.mxu0 %v837_v4  ;;  %v835_v9 = vld [vmem:[%s977_s1 + $0x8] sm:$0xff]   ;;  %v836_v11 = vld [vmem:[%s977_s1] sm:$0xff]   ;;  %v849_v13 = vld [vmem:[%s979_s3 + $0x18] sm:$0xff]  }
   0x5   :  { %797 = vmatprep.subr.bf16.mxu1 %v845_v7  ;;  %v847_v10 = vld [vmem:[%s979_s3 + $0x28] sm:$0xff]   ;;  %v848_v12 = vld [vmem:[%s979_s3 + $0x20] sm:$0xff]   ;;  %v839_v15 = vld [vmem:[%s978_s0 + $0x10] sm:$0xff]  }
   0x6   :  { %798 = vmatpush3.bf16.msra.mxu1 %v845_v7  ;;  %v838_v14 = vld [vmem:[%s978_s0 + $0x8] sm:$0xff]   ;;  %v840_v16 = vld [vmem:[%s978_s0 + $0x18] sm:$0xff]   ;;  %v841_v17 = vld [vmem:[%s978_s0 + $0x20] sm:$0xff]  }
   0x7   :  { %768 = vmatpush3.bf16.msra.mxu0 %v830_v1  ;;  %799 = vmatprep.subr.bf16.mxu1 %v846_v8  ;;  %v842_v18 = vld [vmem:[%s978_s0 + $0x28] sm:$0xff]   ;;  %v843_v19 = vld [vmem:[%s978_s0 + $0x30] sm:$0xff]   ;;  %v844_v20 = vld [vmem:[%s978_s0 + $0x38] sm:$0xff]  }
   0x8   :  { %769 = vmatprep.subr.bf16.mxu0 %v831_v2  ;;  %v850_v21 = vld [vmem:[%s979_s3 + $0x10] sm:$0xff]   ;;  %v851_v22 = vld [vmem:[%s979_s3 + $0x8] sm:$0xff]   ;;  %v852_v23 = vld [vmem:[%s979_s3] sm:$0xff]  }
   0x9   :  { %v645_v26 = vld [vmem:[%s980_s2] ss:$0 sm:$0xff] }
   0xa   :  { %800 = vmatpush3.bf16.msra.mxu1 %v846_v8 }
   0xb   :  { %770 = vmatpush3.bf16.msra.mxu0 %v831_v2  ;;  %801 = vmatprep.subr.bf16.mxu1 %v847_v10 }
   0xc   :  { %771 = vmatprep.subr.bf16.mxu0 %v832_v3 }
   0xe   :  { %802 = vmatpush3.bf16.msra.mxu1 %v847_v10 }
   0xf   :  { %772 = vmatpush3.bf16.msra.mxu0 %v832_v3  ;;  %803 = vmatprep.subr.bf16.mxu1 %v848_v12 }
  0x10   :  { %773 = vmatprep.subr.bf16.mxu0 %v833_v5 }
  0x12   :  { %804 = vmatpush3.bf16.msra.mxu1 %v848_v12 }
  0x13   :  { %774 = vmatpush3.bf16.msra.mxu0 %v833_v5  ;;  %805 = vmatprep.subr.bf16.mxu1 %v849_v13 }
  0x14   :  { %775 = vmatprep.subr.bf16.mxu0 %v834_v6 }
  0x16   :  { %806 = vmatpush3.bf16.msra.mxu1 %v849_v13 }
  0x17   :  { %776 = vmatpush3.bf16.msra.mxu0 %v834_v6  ;;  %807 = vmatprep.subr.bf16.mxu1 %v850_v21 }
  0x18   :  { %777 = vmatprep.subr.bf16.mxu0 %v835_v9 }
  0x1a   :  { %808 = vmatpush3.bf16.msra.mxu1 %v850_v21 }
  0x1b   :  { %778 = vmatpush3.bf16.msra.mxu0 %v835_v9  ;;  %809 = vmatprep.subr.bf16.mxu1 %v851_v22 }
  0x1c   :  { %779 = vmatprep.subr.bf16.mxu0 %v836_v11 }
  0x1e   :  { %810 = vmatpush3.bf16.msra.mxu1 %v851_v22 }
  0x1f   :  { %780 = vmatpush3.bf16.msra.mxu0 %v836_v11  ;;  %811 = vmatprep.subr.bf16.mxu1 %v852_v23 }
  0x22   :  { %782 = vmatmul.mubr.bf16.vlgmr.msra.gmra.mxu0 %v838_v14  ;;  %812 = vmatpush3.bf16.msra.mxu1 %v852_v23 }
  0x23   :  { %785 = vmatprep.mubr.bf16.mxu0 %v839_v15 }
  0x2a   :  { %786 = vmatmul.mubr.bf16.gmra.mxu0 %v840_v16 }
  0x2b   :  { %789 = vmatprep.mubr.bf16.mxu0 %v841_v17 }
  0x32   :  { %790 = vmatmul.mubr.bf16.gmra.mxu0 %v842_v18 }
  0x33   :  { %793 = vmatprep.mubr.bf16.mxu0 %v843_v19 }
  0x3a   :  { %794 = vmatmul.mubr.bf16.gmra.mxu0 %v844_v20 }
  0xe2   :  { %v783_v24 = vpop.f32.mrf.mxu0 }
  0xe3   :  { %v344_v30 = vadd.f32 %v783_v24, %v645_v26 }
  0xe4   :  { %v221_v25 = vpop.f32.mrf.mxu0 }
  0xe5   :  { %v342_v28 = vadd.f32 %v645_v26, %v221_v25  ;;  %v360_v37 = vmax.f32 %v344_v30, 0.0 }
  0xe6   :  { %v784_v27 = vpop.f32.mrf.mxu0 }
  0xe7   :  { %v345_v29 = vadd.f32 %v784_v27, %v645_v26  ;;  %v358_v35 = vmax.f32 %v342_v28, 0.0 }
  0xe8   :  { %v224_v31 = vpop.f32.mrf.mxu0 }
  0xe9   :  { %v343_v32 = vadd.f32 %v645_v26, %v224_v31  ;;  %v361_v33 = vmax.f32 %v345_v29, 0.0 }
  0xea   :  { %v787_v34 = vpop.f32.mrf.mxu0 }
  0xeb   :  { %v359_v36 = vmax.f32 %v343_v32, 0.0  ;;  %v375_v40 = vpack.c.bf16 %v361_v33, %v360_v37  ;;  %v348_v44 = vadd.f32 %v787_v34, %v645_v26 }
  0xec   :  { %v237_v38 = vpop.f32.mrf.mxu0 }
  0xed   :  { %v374_v39 = vpack.c.bf16 %v359_v36, %v358_v35  ;;  %v346_v42 = vadd.f32 %v645_v26, %v237_v38  ;;  %v364_v51 = vmax.f32 %v348_v44, 0.0 }
  0xee   :  { %v788_v41 = vpop.f32.mrf.mxu0 }
  0xef   :  { %v349_v43 = vadd.f32 %v788_v41, %v645_v26  ;;  %813 = vmatprep.mubr.bf16.mxu1 %v374_v39  ;;  %v362_v49 = vmax.f32 %v346_v42, 0.0 }
  0xf0   :  { %v240_v45 = vpop.f32.mrf.mxu0  ;;  %814 = vmatmul.mubr.bf16.vlgmr.msra.gmra.mxu1 %v375_v40 }
  0xf1   :  { %v347_v46 = vadd.f32 %v645_v26, %v240_v45  ;;  %v365_v47 = vmax.f32 %v349_v43, 0.0 }
  0xf2   :  { %v791_v48 = vpop.f32.mrf.mxu0 }
  0xf3   :  { %v363_v50 = vmax.f32 %v347_v46, 0.0  ;;  %v377_v54 = vpack.c.bf16 %v365_v47, %v364_v51  ;;  %v352_v58 = vadd.f32 %v791_v48, %v645_v26 }
  0xf4   :  { %v253_v52 = vpop.f32.mrf.mxu0 }
  0xf5   :  { %v376_v53 = vpack.c.bf16 %v363_v50, %v362_v49  ;;  %v350_v56 = vadd.f32 %v645_v26, %v253_v52  ;;  %v368_v1 = vmax.f32 %v352_v58, 0.0 }
  0xf6   :  { %v792_v55 = vpop.f32.mrf.mxu0 }
  0xf7   :  { %v353_v57 = vadd.f32 %v792_v55, %v645_v26  ;;  %817 = vmatprep.mubr.bf16.mxu1 %v376_v53  ;;  %v366_v63 = vmax.f32 %v350_v56, 0.0 }
  0xf8   :  { %v256_v59 = vpop.f32.mrf.mxu0  ;;  %818 = vmatmul.mubr.bf16.gmra.mxu1 %v377_v54 }
  0xf9   :  { %v351_v60 = vadd.f32 %v645_v26, %v256_v59  ;;  %v369_v61 = vmax.f32 %v353_v57, 0.0 }
  0xfa   :  { %v795_v62 = vpop.f32.mrf.mxu0 }
  0xfb   :  { %v367_v0 = vmax.f32 %v351_v60, 0.0  ;;  %v379_v4 = vpack.c.bf16 %v369_v61, %v368_v1  ;;  %v356_v8 = vadd.f32 %v795_v62, %v645_v26 }
  0xfc   :  { %v269_v2 = vpop.f32.mrf.mxu0 }
  0xfd   :  { %v378_v3 = vpack.c.bf16 %v367_v0, %v366_v63  ;;  %v354_v6 = vadd.f32 %v645_v26, %v269_v2  ;;  %v372_v14 = vmax.f32 %v356_v8, 0.0 }
  0xfe   :  { %v796_v5 = vpop.f32.mrf.mxu0 }
  0xff   :  { %v357_v7 = vadd.f32 %v796_v5, %v645_v26  ;;  %821 = vmatprep.mubr.bf16.mxu1 %v378_v3  ;;  %v370_v12 = vmax.f32 %v354_v6, 0.0 }
 0x100   :  { %v272_v9 = vpop.f32.mrf.mxu0  ;;  %822 = vmatmul.mubr.bf16.gmra.mxu1 %v379_v4 }
 0x101   :  { %v355_v10 = vadd.f32 %v645_v26, %v272_v9  ;;  %v373_v11 = vmax.f32 %v357_v7, 0.0 }
 0x103   :  { %v371_v13 = vmax.f32 %v355_v10, 0.0  ;;  %v381_v16 = vpack.c.bf16 %v373_v11, %v372_v14 }
 0x105   :  { %v380_v15 = vpack.c.bf16 %v371_v13, %v370_v12 }
 0x107   :  { %825 = vmatprep.mubr.bf16.mxu1 %v380_v15 }
 0x108   :  { %826 = vmatmul.mubr.bf16.gmra.mxu1 %v381_v16 }
 0x1b0   :  { %v815_v17 = vpop.f32.mrf.mxu1 }
 0x1b2   :  { %v480_v18 = vpop.f32.mrf.mxu1 }
 0x1b4   :  { %v816_v19 = vpop.f32.mrf.mxu1 }
 0x1b5   :  { %v694_v20 = vpack.c.bf16 %v816_v19, %v815_v17 }
 0x1b6   :  { %v483_v21 = vpop.f32.mrf.mxu1 }
 0x1b7   :  { %726 = vst [vmem:[%s981_s4 + $0x8] sm:$0xff] %v694_v20   ;;  %v689_v22 = vpack.c.bf16 %v483_v21, %v480_v18 }
 0x1b8   :  { %v819_v23 = vpop.f32.mrf.mxu1 }
 0x1b9   :  { %690 = vst [vmem:[%s981_s4] sm:$0xff] %v689_v22  }
 0x1ba   :  { %v496_v24 = vpop.f32.mrf.mxu1 }
 0x1bc   :  { %v820_v25 = vpop.f32.mrf.mxu1 }
 0x1bd   :  { %v704_v26 = vpack.c.bf16 %v820_v25, %v819_v23 }
 0x1be   :  { %v499_v27 = vpop.f32.mrf.mxu1 }
 0x1bf   :  { %728 = vst [vmem:[%s981_s4 + $0x18] sm:$0xff] %v704_v26   ;;  %v699_v28 = vpack.c.bf16 %v499_v27, %v496_v24 }
 0x1c0   :  { %v823_v29 = vpop.f32.mrf.mxu1 }
 0x1c1   :  { %727 = vst [vmem:[%s981_s4 + $0x10] sm:$0xff] %v699_v28  }
 0x1c2   :  { %v512_v30 = vpop.f32.mrf.mxu1 }
 0x1c4   :  { %v824_v31 = vpop.f32.mrf.mxu1 }
 0x1c5   :  { %v714_v32 = vpack.c.bf16 %v824_v31, %v823_v29 }
 0x1c6   :  { %v515_v33 = vpop.f32.mrf.mxu1 }
 0x1c7   :  { %730 = vst [vmem:[%s981_s4 + $0x28] sm:$0xff] %v714_v32   ;;  %v709_v34 = vpack.c.bf16 %v515_v33, %v512_v30 }
 0x1c8   :  { %v827_v35 = vpop.f32.mrf.mxu1 }
 0x1c9   :  { %729 = vst [vmem:[%s981_s4 + $0x20] sm:$0xff] %v709_v34  }
 0x1ca   :  { %v528_v36 = vpop.f32.mrf.mxu1 }
 0x1cc   :  { %v828_v37 = vpop.f32.mrf.mxu1 }
 0x1cd   :  { %v724_v38 = vpack.c.bf16 %v828_v37, %v827_v35 }
 0x1ce   :  { %v531_v39 = vpop.f32.mrf.mxu1 }
 0x1cf   :  { %732 = vst [vmem:[%s981_s4 + $0x38] sm:$0xff] %v724_v38   ;;  %v719_v40 = vpack.c.bf16 %v531_v39, %v528_v36 }
 0x1d1   :  { %731 = vst [vmem:[%s981_s4 + $0x30] sm:$0xff] %v719_v40  }

// kernel: gcn_forward.3
= control target key start
LH: loop header
LB: loop body
LE: loop exit
PB: predicated region body
PF: predicated region fallthrough
CT: control target
= control target key end

     0   :  { %s928_s1 = inlined_call_operand.vmem [shape: bf16[128,128], index: 1, kind: input, shape index: {}]   ;;  %s929_s0 = inlined_call_operand.vmem [shape: bf16[128,128], index: 0, kind: input, shape index: {}]   ;;  %s930_s2 = inlined_call_operand.vmem [shape: f32[1,128], index: 2, kind: input, shape index: {}]   ;;  %s931_s3 = inlined_call_operand.vmem [shape: f32[1,128], index: 3, kind: input, shape index: {}]   ;;  %s932_s4 = inlined_call_operand.<no memory space> [shape: f32[1], index: 4, kind: input, shape index: {}]   ;;  %s933_s5 = inlined_call_operand.vmem [shape: bf16[128,128], index: 5, kind: output, shape index: {}]  }
   0x1   :  { %v701_v0 = vld [vmem:[%s928_s1 + $0x38] sm:$0xff]   ;;  %v702_v1 = vld [vmem:[%s928_s1 + $0x30] sm:$0xff]   ;;  %v703_v2 = vld [vmem:[%s928_s1 + $0x28] sm:$0xff]  }
   0x2   :  { %651 = vmatprep.subr.bf16.mxu0 %v701_v0  ;;  %683 = vmatprep.subr.bf16.mxu1 %v701_v0  ;;  %v704_v3 = vld [vmem:[%s928_s1 + $0x20] sm:$0xff]   ;;  %v705_v6 = vld [vmem:[%s928_s1 + $0x18] sm:$0xff]   ;;  %v706_v7 = vld [vmem:[%s928_s1 + $0x10] sm:$0xff]  }
   0x3   :  { %652 = vmatpush3.bf16.msra.mxu0 %v701_v0  ;;  %691 = vmatpush3.bf16.msra.mxu1 %v701_v0  ;;  %v709_v4 = vld [vmem:[%s929_s0] sm:$0xff]   ;;  %v707_v8 = vld [vmem:[%s928_s1 + $0x8] sm:$0xff]   ;;  %v713_v12 = vld [vmem:[%s929_s0 + $0x10] sm:$0xff]  }
   0x4   :  { %653 = vmatprep.subr.bf16.mxu0 %v702_v1  ;;  %684 = vmatprep.subr.bf16.mxu1 %v702_v1  ;;  %v710_v5 = vld [vmem:[%s929_s0 + $0x20] sm:$0xff]   ;;  %v711_v10 = vld [vmem:[%s929_s0 + $0x8] sm:$0xff]   ;;  %v715_v13 = vld [vmem:[%s929_s0 + $0x30] sm:$0xff]  }
   0x5   :  { %667 = vmatprep.mubr.bf16.mxu0 %v709_v4  ;;  %675 = vmatprep.mubr.bf16.mxu1 %v710_v5  ;;  %v708_v9 = vld [vmem:[%s928_s1] sm:$0xff]   ;;  %v712_v11 = vld [vmem:[%s929_s0 + $0x28] sm:$0xff]   ;;  %v714_v14 = vld [vmem:[%s929_s0 + $0x18] sm:$0xff]  }
   0x6   :  { %v716_v15 = vld [vmem:[%s929_s0 + $0x38] sm:$0xff]   ;;  %v800_v16 = vld [vmem:[%s930_s2] ss:$0 sm:$0xff] }
   0x7   :  { %654 = vmatpush3.bf16.msra.mxu0 %v702_v1  ;;  %692 = vmatpush3.bf16.msra.mxu1 %v702_v1  ;;  %v808_v26 = vld [vmem:[%s931_s3] ss:$0 sm:$0xff] }
   0x8   :  { %655 = vmatprep.subr.bf16.mxu0 %v703_v2  ;;  %685 = vmatprep.subr.bf16.mxu1 %v703_v2 }
   0xb   :  { %656 = vmatpush3.bf16.msra.mxu0 %v703_v2  ;;  %693 = vmatpush3.bf16.msra.mxu1 %v703_v2 }
   0xc   :  { %657 = vmatprep.subr.bf16.mxu0 %v704_v3  ;;  %686 = vmatprep.subr.bf16.mxu1 %v704_v3 }
   0xf   :  { %658 = vmatpush3.bf16.msra.mxu0 %v704_v3  ;;  %694 = vmatpush3.bf16.msra.mxu1 %v704_v3 }
  0x10   :  { %659 = vmatprep.subr.bf16.mxu0 %v705_v6  ;;  %687 = vmatprep.subr.bf16.mxu1 %v705_v6 }
  0x13   :  { %660 = vmatpush3.bf16.msra.mxu0 %v705_v6  ;;  %695 = vmatpush3.bf16.msra.mxu1 %v705_v6 }
  0x14   :  { %661 = vmatprep.subr.bf16.mxu0 %v706_v7  ;;  %688 = vmatprep.subr.bf16.mxu1 %v706_v7 }
  0x17   :  { %662 = vmatpush3.bf16.msra.mxu0 %v706_v7  ;;  %696 = vmatpush3.bf16.msra.mxu1 %v706_v7 }
  0x18   :  { %663 = vmatprep.subr.bf16.mxu0 %v707_v8  ;;  %689 = vmatprep.subr.bf16.mxu1 %v707_v8 }
  0x1b   :  { %664 = vmatpush3.bf16.msra.mxu0 %v707_v8  ;;  %697 = vmatpush3.bf16.msra.mxu1 %v707_v8 }
  0x1c   :  { %665 = vmatprep.subr.bf16.mxu0 %v708_v9  ;;  %690 = vmatprep.subr.bf16.mxu1 %v708_v9 }
  0x1f   :  { %666 = vmatpush3.bf16.msra.mxu0 %v708_v9  ;;  %698 = vmatpush3.bf16.msra.mxu1 %v708_v9 }
  0x22   :  { %668 = vmatmul.mubr.bf16.vlgmr.msra.gmra.mxu0 %v711_v10  ;;  %676 = vmatmul.mubr.bf16.vlgmr.msra.gmra.mxu1 %v712_v11 }
  0x23   :  { %671 = vmatprep.mubr.bf16.mxu0 %v713_v12  ;;  %679 = vmatprep.mubr.bf16.mxu1 %v715_v13 }
  0x2a   :  { %672 = vmatmul.mubr.bf16.gmra.mxu0 %v714_v14  ;;  %680 = vmatmul.mubr.bf16.gmra.mxu1 %v716_v15 }
  0xe2   :  { %v669_v17 = vpop.f32.mrf.mxu0  ;;  %v677_v18 = vpop.f32.mrf.mxu1 }
  0xe3   :  { %v348_v19 = vadd.f32 %v669_v17, %v800_v16  ;;  %v356_v20 = vadd.f32 %v677_v18, %v800_v16 }
  0xe4   :  { %v225_v21 = vpop.f32.mrf.mxu0  ;;  %v257_v22 = vpop.f32.mrf.mxu1 }
  0xe5   :  { %v364_v23 = vmax.f32 %v348_v19, 0.0  ;;  %v372_v24 = vmax.f32 %v356_v20, 0.0  ;;  %v346_v25 = vadd.f32 %v800_v16, %v225_v21  ;;  %v354_v29 = vadd.f32 %v800_v16, %v257_v22 }
  0xe6   :  { %v670_v27 = vpop.f32.mrf.mxu0  ;;  %v678_v28 = vpop.f32.mrf.mxu1  ;;  %v470_v20 = vlaneseq  ;;  %v718_v21 = vmov 1985246804  }
  0xe7   :  { %v349_v30 = vadd.f32 %v670_v27, %v800_v16  ;;  %v362_v31 = vmax.f32 %v346_v25, 0.0  ;;  %v357_v32 = vadd.f32 %v678_v28, %v800_v16  ;;  %v395_v35 = vmul.f32 %v808_v26, %v372_v24 }
  0xe8   :  { %v228_v33 = vpop.f32.mrf.mxu0  ;;  %v260_v34 = vpop.f32.mrf.mxu1  ;;  %v387_v36 = vmul.f32 %v808_v26, %v364_v23  ;;  %v370_v40 = vmax.f32 %v354_v29, 0.0  ;;  %v475_v22 = vunpack.c.l.s4 %v718_v21  ;;  %v471_v27 = vshrl.u32 %v470_v20, 7 }
  0xe9   :  { %v365_v37 = vmax.f32 %v349_v30, 0.0  ;;  %421 = vadd.xlane.f32.xlu0 %v395_v35  ;;  %v373_v42 = vmax.f32 %v357_v32, 0.0  ;;  %v347_v43 = vadd.f32 %v800_v16, %v228_v33  ;;  %v355_v44 = vadd.f32 %v800_v16, %v260_v34 }
  0xea   :  { %405 = vadd.xlane.f32.xlu1 %v387_v36  ;;  %v673_v38 = vpop.f32.mrf.mxu0  ;;  %v681_v39 = vpop.f32.mrf.mxu1  ;;  %v385_v46 = vmul.f32 %v808_v26, %v362_v31  ;;  %v393_v50 = vmul.f32 %v808_v26, %v370_v40  ;;  %v476_v28 = vunpack.c.0.s8 %v475_v22  ;;  %v842_v29 = vstv %s932_s4 }
  0xeb   :  { %v388_v41 = vmul.f32 %v808_v26, %v365_v37  ;;  %v352_v49 = vadd.f32 %v673_v38, %v800_v16  ;;  %v363_v51 = vmax.f32 %v347_v43, 0.0  ;;  %v371_v52 = vmax.f32 %v355_v44, 0.0 }
  0xec   :  { %v241_v45 = vpop.f32.mrf.mxu0  ;;  %v273_v47 = vpop.f32.mrf.mxu1  ;;  %v396_v54 = vmul.f32 %v808_v26, %v373_v42  ;;  %v360_v6 = vadd.f32 %v681_v39, %v800_v16  ;;  %v847_v33 = vsub.s32 %v476_v28, %v471_v27 }
  0xed   :  { %401 = vadd.xlane.f32.xlu0 %v385_v46  ;;  %v368_v57 = vmax.f32 %v352_v49, 0.0  ;;  %v350_v58 = vadd.f32 %v800_v16, %v241_v45  ;;  %v394_v61 = vmul.f32 %v808_v26, %v371_v52  ;;  %v386_v62 = vmul.f32 %v808_v26, %v363_v51 }
  0xee   :  { %407 = vadd.xlane.f32.xlu1 %v388_v41  ;;  %v674_v48 = vpop.f32.mrf.mxu0  ;;  %v682_v56 = vpop.f32.mrf.mxu1  ;;  %v358_v1 = vadd.f32 %v800_v16, %v273_v47  ;;  %v376_v12 = vmax.f32 %v360_v6, 0.0 }
  0xef   :  { %v353_v53 = vadd.f32 %v674_v48, %v800_v16  ;;  %v366_v0 = vmax.f32 %v350_v58, 0.0  ;;  %v391_v4 = vmul.f32 %v808_v26, %v368_v57  ;;  %v361_v8 = vadd.f32 %v682_v56, %v800_v16 }
  0xf0   :  { %v244_v55 = vpop.f32.mrf.mxu0  ;;  %v276_v63 = vpop.f32.mrf.mxu1  ;;  %v374_v7 = vmax.f32 %v358_v1, 0.0  ;;  %v399_v17 = vmul.f32 %v808_v26, %v376_v12 }
  0xf1   :  { %417 = vadd.xlane.f32.xlu0 %v393_v50  ;;  %v369_v59 = vmax.f32 %v353_v53, 0.0  ;;  %v351_v60 = vadd.f32 %v800_v16, %v244_v55  ;;  %v359_v3 = vadd.f32 %v800_v16, %v276_v63  ;;  %v389_v10 = vmul.f32 %v808_v26, %v366_v0 }
  0xf2   :  { %423 = vadd.xlane.f32.xlu1 %v396_v54  ;;  %v377_v13 = vmax.f32 %v361_v8, 0.0  ;;  %v397_v14 = vmul.f32 %v808_v26, %v374_v7  ;;  %v717_v16 = vmov 839922192  }
  0xf3   :  { %v367_v2 = vmax.f32 %v351_v60, 0.0  ;;  %v392_v5 = vmul.f32 %v808_v26, %v369_v59  ;;  %v375_v9 = vmax.f32 %v359_v3, 0.0  ;;  %v468_v19 = vunpack.c.l.s4 %v717_v16 }
  0xf4   :  { %v400_v18 = vmul.f32 %v808_v26, %v377_v13 }
  0xf5   :  { %403 = vadd.xlane.f32.xlu0 %v386_v62  ;;  %v390_v11 = vmul.f32 %v808_v26, %v367_v2  ;;  %v398_v15 = vmul.f32 %v808_v26, %v375_v9  ;;  %v469_v25 = vunpack.c.0.s8 %v468_v19 }
  0xf6   :  { %419 = vadd.xlane.f32.xlu1 %v394_v61 }
  0xf7   :  { %v845_v32 = vsub.s32 %v469_v25, %v471_v27 }
  0xf9   :  { %413 = vadd.xlane.f32.xlu0 %v391_v4 }
  0xfa   :  { %415 = vadd.xlane.f32.xlu1 %v392_v5 }
  0xfd   :  { %409 = vadd.xlane.f32.xlu0 %v389_v10 }
  0xfe   :  { %411 = vadd.xlane.f32.xlu1 %v390_v11 }
 0x101   :  { %425 = vadd.xlane.f32.xlu0 %v397_v14 }
 0x102   :  { %427 = vadd.xlane.f32.xlu1 %v398_v15 }
 0x105   :  { %429 = vadd.xlane.f32.xlu0 %v399_v17 }
 0x106   :  { %431 = vadd.xlane.f32.xlu1 %v400_v18 }
 0x172   :  { %v422_v23 = vpop.xlane.xlu0 %421 }
 0x173   :  { %v406_v24 = vpop.xlane.xlu1 %405  ;;  %v445_v38 = vadd.f32 %v842_v29, %v422_v23 }
 0x174   :  { %v437_v26 = vadd.f32 %v842_v29, %v406_v24 }
 0x176   :  { %v402_v30 = vpop.xlane.xlu0 %401 }
 0x177   :  { %v408_v31 = vpop.xlane.xlu1 %407  ;;  %v435_v43 = vadd.f32 %v842_v29, %v402_v30 }
 0x178   :  { %v438_v34 = vadd.f32 %v842_v29, %v408_v31 }
 0x17a   :  { %v452_v35 = vpack.c.bf16 %v438_v34, %v437_v26  ;;  %v418_v36 = vpop.xlane.xlu0 %417 }
 0x17b   :  { %v424_v37 = vpop.xlane.xlu1 %423  ;;  %v443_v44 = vadd.f32 %v842_v29, %v418_v36 }
 0x17c   :  { %v487_v39 = vrot.slane %v452_v35, %v845_v32  ;;  %v494_v40 = vrot.slane %v452_v35, %v847_v33  ;;  %v446_v41 = vadd.f32 %v842_v29, %v424_v37 }
 0x17e   :  { %597 = vst [vmem:[%s933_s5 + $0x8] sm:$0xf] %v487_v39  ;;  %598 = vst [vmem:[%s933_s5 + $0xc] sm:$0xf] %v494_v40  ;;  %v456_v42 = vpack.c.bf16 %v446_v41, %v445_v38  ;;  %v404_v46 = vpop.xlane.xlu0 %403 }
 0x17f   :  { %v420_v45 = vpop.xlane.xlu1 %419  ;;  %v436_v50 = vadd.f32 %v842_v29, %v404_v46 }
 0x180   :  { %v543_v47 = vrot.slane %v456_v42, %v845_v32  ;;  %v550_v48 = vrot.slane %v456_v42, %v847_v33  ;;  %v444_v49 = vadd.f32 %v842_v29, %v420_v45 }
 0x181   :  { %v451_v52 = vpack.c.bf16 %v436_v50, %v435_v43 }
 0x182   :  { %605 = vst [vmem:[%s933_s5 + $0x28] sm:$0xf] %v543_v47  ;;  %606 = vst [vmem:[%s933_s5 + $0x2c] sm:$0xf] %v550_v48  ;;  %v455_v51 = vpack.c.bf16 %v444_v49, %v443_v44  ;;  %v414_v53 = vpop.xlane.xlu0 %413 }
 0x183   :  { %v416_v54 = vpop.xlane.xlu1 %415  ;;  %v473_v57 = vrot.slane %v451_v52, %v845_v32  ;;  %v480_v58 = vrot.slane %v451_v52, %v847_v33  ;;  %v441_v59 = vadd.f32 %v842_v29, %v414_v53 }
 0x184   :  { %v529_v55 = vrot.slane %v455_v51, %v845_v32  ;;  %v536_v56 = vrot.slane %v455_v51, %v847_v33  ;;  %v442_v60 = vadd.f32 %v842_v29, %v416_v54 }
 0x185   :  { %595 = vst [vmem:[%s933_s5] sm:$0xf] %v473_v57  ;;  %596 = vst [vmem:[%s933_s5 + $0x4] sm:$0xf] %v480_v58 }
 0x186   :  { %603 = vst [vmem:[%s933_s5 + $0x20] sm:$0xf] %v529_v55  ;;  %604 = vst [vmem:[%s933_s5 + $0x24] sm:$0xf] %v536_v56  ;;  %v454_v61 = vpack.c.bf16 %v442_v60, %v441_v59  ;;  %v410_v62 = vpop.xlane.xlu0 %409 }
 0x187   :  { %v412_v63 = vpop.xlane.xlu1 %411  ;;  %v439_v0 = vadd.f32 %v842_v29, %v410_v62 }
 0x188   :  { %v440_v1 = vadd.f32 %v842_v29, %v412_v63  ;;  %v515_v2 = vrot.slane %v454_v61, %v845_v32  ;;  %v522_v3 = vrot.slane %v454_v61, %v847_v33 }
 0x18a   :  { %v453_v4 = vpack.c.bf16 %v440_v1, %v439_v0  ;;  %601 = vst [vmem:[%s933_s5 + $0x18] sm:$0xf] %v515_v2  ;;  %602 = vst [vmem:[%s933_s5 + $0x1c] sm:$0xf] %v522_v3  ;;  %v426_v5 = vpop.xlane.xlu0 %425 }
 0x18b   :  { %v428_v6 = vpop.xlane.xlu1 %427  ;;  %v447_v9 = vadd.f32 %v842_v29, %v426_v5 }
 0x18c   :  { %v501_v7 = vrot.slane %v453_v4, %v845_v32  ;;  %v508_v8 = vrot.slane %v453_v4, %v847_v33  ;;  %v448_v10 = vadd.f32 %v842_v29, %v428_v6 }
 0x18e   :  { %599 = vst [vmem:[%s933_s5 + $0x10] sm:$0xf] %v501_v7  ;;  %600 = vst [vmem:[%s933_s5 + $0x14] sm:$0xf] %v508_v8  ;;  %v457_v11 = vpack.c.bf16 %v448_v10, %v447_v9  ;;  %v430_v12 = vpop.xlane.xlu0 %429 }
 0x18f   :  { %v432_v13 = vpop.xlane.xlu1 %431  ;;  %v449_v17 = vadd.f32 %v842_v29, %v430_v12 }
 0x190   :  { %v557_v14 = vrot.slane %v457_v11, %v845_v32  ;;  %v564_v15 = vrot.slane %v457_v11, %v847_v33  ;;  %v450_v18 = vadd.f32 %v842_v29, %v432_v13 }
 0x192   :  { %607 = vst [vmem:[%s933_s5 + $0x30] sm:$0xf] %v557_v14  ;;  %608 = vst [vmem:[%s933_s5 + $0x34] sm:$0xf] %v564_v15  ;;  %v458_v16 = vpack.c.bf16 %v450_v18, %v449_v17 }
 0x194   :  { %v571_v19 = vrot.slane %v458_v16, %v845_v32  ;;  %v578_v20 = vrot.slane %v458_v16, %v847_v33 }
 0x196   :  { %609 = vst [vmem:[%s933_s5 + $0x38] sm:$0xf] %v571_v19  ;;  %610 = vst [vmem:[%s933_s5 + $0x3c] sm:$0xf] %v578_v20 }

</bundles_post_ra>
